<compile_context>
chip_gen: v7x
topology: tpu7x:2x2x1
jax: 0.10.0
libtpu: 0.0.40
codegen_flags: <defaults>
</compile_context>

<pallas_src>
import jax
import jax.numpy as jnp
from jax.experimental import pallas as pl
from jax.experimental.pallas import tpu as pltpu


def _attention_pool_kernel(q_ref, wh_ref, h_ref, o_ref):
    tb, num_layers, _ = h_ref.shape
    qf = q_ref[...].astype(jnp.float32)                            # (1, H) f32

    # ---- scores[b, l] = sum_h q[h] * h[b, l, h]   (VPU mul + lane reduce, no transpose)
    lane_ids = jax.lax.broadcasted_iota(jnp.int32, (tb, num_layers), 1)
    scores = jnp.zeros((tb, num_layers), jnp.float32)
    for l in range(num_layers):                                    # L is small & static
        hl = h_ref[:, l, :].astype(jnp.float32)                    # (TB, H)
        col = jnp.sum(hl * qf, axis=-1, keepdims=True)             # (TB, 1)
        scores = jnp.where(lane_ids == l, col, scores)             # place into column l

    # ---- numerically stable softmax over the layer axis (f32)
    m = jnp.max(scores, axis=-1, keepdims=True)
    e = jnp.exp(scores - m)
    denom = jnp.sum(e, axis=-1, keepdims=True)
    p = e * pl.reciprocal(denom, approx=True)                      # (TB, L)

    # ---- ctx = sum_l p[:, l] * h[:, l, :]   (VPU weighted sum, f32 accumulation)
    ctx = p[:, 0:1] * h_ref[:, 0, :].astype(jnp.float32)           # (TB, H)
    for l in range(1, num_layers):
        ctx = ctx + p[:, l:l + 1] * h_ref[:, l, :].astype(jnp.float32)

    # ---- out = ctx @ w_h   (MXU, bf16 operands, f32 accumulation), lane-dense store
    o_ref[...] = jnp.dot(ctx.astype(wh_ref.dtype), wh_ref[...],
                         preferred_element_type=jnp.float32)       # (TB, Dp)


def _pick_block_b(batch, num_layers, hidden, d_pad, budget_bytes=32 * 1024 * 1024):
    """Largest batch tile (multiple of 8) whose double-buffered working set fits the budget."""
    b8 = max(8, ((batch + 7) // 8) * 8)
    resident = 2 * hidden * d_pad * 2 + 2 * hidden * 4             # w_h (bf16) + q (f32)
    for tb in (512, 256, 128, 64, 32, 16, 8):
        if tb > b8:
            continue
        per_tile = (2 * tb * num_layers * hidden * 2               # h block, bf16, 2 buffers
                    + 2 * tb * d_pad * 4                           # out block, f32, 2 buffers
                    + 6 * tb * hidden * 4                          # f32 temporaries (hl, ctx, out)
                    + 4 * tb * num_layers * 4)                     # scores / p temporaries
        if resident + per_tile <= budget_bytes:
            return tb
    return 8


@jax.jit
def attention_pooling(q, w_h, hidden_states):
    """q: (1, H); w_h: (H, D_fc); hidden_states: (B, L, H). Returns (B, D_fc) float32."""
    B, L, H = hidden_states.shape
    D = w_h.shape[1]

    # Lane-dense output: pad the projection dim up to a multiple of 128.
    Dp = ((D + 127) // 128) * 128
    w_hp = w_h if Dp == D else jnp.pad(w_h, ((0, 0), (0, Dp - D)))

    block_b = _pick_block_b(B, L, H, Dp)
    Bp = ((B + block_b - 1) // block_b) * block_b
    hp = hidden_states if Bp == B else jnp.pad(hidden_states, ((0, Bp - B), (0, 0), (0, 0)))

    # bf16 for the big HBM operands; the kernel accumulates in f32.
    hp = hp.astype(jnp.bfloat16)
    w_hp = w_hp.astype(jnp.bfloat16)
    q32 = q.astype(jnp.float32)

    out = pl.pallas_call(
        _attention_pool_kernel,
        out_shape=jax.ShapeDtypeStruct((Bp, Dp), jnp.float32),
        grid_spec=pltpu.PrefetchScalarGridSpec(
            num_scalar_prefetch=0,
            grid=(Bp // block_b,),
            in_specs=[
                pl.BlockSpec((1, H), lambda i: (0, 0)),              # q    (resident)
                pl.BlockSpec((H, Dp), lambda i: (0, 0)),             # w_h  (resident)
                pl.BlockSpec((block_b, L, H), lambda i: (i, 0, 0)),  # h    (streamed)
            ],
            out_specs=pl.BlockSpec((block_b, Dp), lambda i: (i, 0)),
        ),
        compiler_params=pltpu.CompilerParams(
            dimension_semantics=("parallel",),
            vmem_limit_bytes=48 * 1024 * 1024,
        ),
    )(q32, w_hp, hp)

    return out[:B, :D]


if __name__ == "__main__":
    # Small, shape-consistent configuration:
    B, S, H = 2, 8, 32       # batch, seq_len, hidden_size
    L = 4                    # num_hidden_layers
    D_fc = 16                # hidden_dim_fc

    key = jax.random.PRNGKey(0)
    k1, k2, k3 = jax.random.split(key, 3)

    # Simulated transformer outputs.hidden_states: (L+1, B, S, H) (embeddings + L layers)
    all_hidden_states = jax.random.normal(k1, (L + 1, B, S, H), dtype=jnp.float32)

    # Deterministic parameter init (same shapes/scale as np.random.normal(0, 0.1, ...))
    q = 0.1 * jax.random.normal(k2, (1, H), dtype=jnp.float32)
    w_h = 0.1 * jax.random.normal(k3, (H, D_fc), dtype=jnp.float32)

    # --- glue matching the PyTorch forward exactly ---
    # torch.stack([ahs[l][:, 0].squeeze() for l in 1..L], dim=-1)  -> (B, H, L)
    cls_tokens = [all_hidden_states[i][:, 0] for i in range(1, L + 1)]  # each (B, H)
    stacked = jnp.stack(cls_tokens, axis=-1)                            # (B, H, L)
    # .view(-1, L, H) on a contiguous tensor == row-major reshape (quirk preserved)
    hidden_states = stacked.reshape(-1, L, H)                           # (B, L, H)

    out = attention_pooling(q, w_h, hidden_states)
    out = jax.block_until_ready(out)
    # TODO(synk): nn.Dropout is identity at inference; training-mode stochastic dropout not implemented.

    # Pure-JAX reference on the same bf16-quantized h / w_h the kernel consumes.
    h_q = hidden_states.astype(jnp.bfloat16).astype(jnp.float32)
    w_q = w_h.astype(jnp.bfloat16).astype(jnp.float32)
    scores = jnp.einsum("oh,blh->bl", q, h_q)
    p = jax.nn.softmax(scores, axis=-1)
    ctx = jnp.einsum("bl,blh->bh", p, h_q)
    ref = ctx @ w_q

    assert out.shape == (B, D_fc)
    assert jnp.allclose(out, ref, atol=2e-2, rtol=2e-2), "Pallas kernel mismatch vs reference"

    print("KERNEL_OK")
</pallas_src>

<mosaic_0001>
module attributes {stable_mosaic.version = 11 : i64} {
  func.func @_attention_pool_kernel(%arg0: i32, %arg1: memref<1x32xf32, #tpu.memory_space<vmem>>, %arg2: memref<32x128xbf16, #tpu.memory_space<vmem>>, %arg3: memref<8x4x32xbf16, #tpu.memory_space<vmem>>, %arg4: memref<8x128xf32, #tpu.memory_space<vmem>>) attributes {dimension_semantics = [#tpu.dimension_semantics<parallel>], iteration_bounds = array<i64: 1>, scalar_prefetch = 0 : i64, scratch_operands = 0 : i64, tpu.core_type = #tpu.core_type<tc>, window_params = [{pipeline_mode = #tpu.pipeline_mode<synchronous>, transform_indices = @transform_0, window_bounds = array<i64: 1, 32>}, {pipeline_mode = #tpu.pipeline_mode<synchronous>, transform_indices = @transform_1, window_bounds = array<i64: 32, 128>}, {transform_indices = @transform_2, window_bounds = array<i64: 8, 4, 32>}, {transform_indices = @transform_3, window_bounds = array<i64: 8, 128>}]} {
    %c0 = arith.constant 0 : index
    %c0_0 = arith.constant 0 : index
    %0 = vector.load %arg1[%c0, %c0_0] : memref<1x32xf32, #tpu.memory_space<vmem>>, vector<1x32xf32>
    %1 = tpu.iota {dimensions = array<i32: 1>} : vector<8x4xi32>
    %cst = arith.constant 0.000000e+00 : f32
    %2 = vector.broadcast %cst : f32 to vector<8x4xf32>
    %c0_1 = arith.constant 0 : index
    %c0_2 = arith.constant 0 : index
    %c0_3 = arith.constant 0 : index
    %3 = vector.load %arg3[%c0_1, %c0_2, %c0_3] : memref<8x4x32xbf16, #tpu.memory_space<vmem>>, vector<8x1x32xbf16>
    %4 = vector.shape_cast %3 : vector<8x1x32xbf16> to vector<8x32xbf16>
    %5 = arith.extf %4 : vector<8x32xbf16> to vector<8x32xf32>
    %6 = vector.broadcast %0 : vector<1x32xf32> to vector<8x32xf32>
    %7 = arith.mulf %5, %6 : vector<8x32xf32>
    %cst_4 = arith.constant dense<0.000000e+00> : vector<8xf32>
    %8 = vector.multi_reduction <add>, %7, %cst_4 [1] : vector<8x32xf32> to vector<8xf32>
    %9 = vector.shape_cast %8 : vector<8xf32> to vector<8x1xf32>
    %c0_i32 = arith.constant 0 : i32
    %10 = vector.broadcast %c0_i32 : i32 to vector<8x4xi32>
    %11 = arith.cmpi eq, %1, %10 : vector<8x4xi32>
    %12 = vector.shape_cast %9 : vector<8x1xf32> to vector<8x1xf32>
    %13 = vector.broadcast %12 : vector<8x1xf32> to vector<8x4xf32>
    %14 = arith.select %11, %13, %2 : vector<8x4xi1>, vector<8x4xf32>
    %c0_5 = arith.constant 0 : index
    %c1 = arith.constant 1 : index
    %c0_6 = arith.constant 0 : index
    %15 = vector.load %arg3[%c0_5, %c1, %c0_6] : memref<8x4x32xbf16, #tpu.memory_space<vmem>>, vector<8x1x32xbf16>
    %16 = vector.shape_cast %15 : vector<8x1x32xbf16> to vector<8x32xbf16>
    %17 = arith.extf %16 : vector<8x32xbf16> to vector<8x32xf32>
    %18 = vector.broadcast %0 : vector<1x32xf32> to vector<8x32xf32>
    %19 = arith.mulf %17, %18 : vector<8x32xf32>
    %cst_7 = arith.constant dense<0.000000e+00> : vector<8xf32>
    %20 = vector.multi_reduction <add>, %19, %cst_7 [1] : vector<8x32xf32> to vector<8xf32>
    %21 = vector.shape_cast %20 : vector<8xf32> to vector<8x1xf32>
    %c1_i32 = arith.constant 1 : i32
    %22 = vector.broadcast %c1_i32 : i32 to vector<8x4xi32>
    %23 = arith.cmpi eq, %1, %22 : vector<8x4xi32>
    %24 = vector.shape_cast %21 : vector<8x1xf32> to vector<8x1xf32>
    %25 = vector.broadcast %24 : vector<8x1xf32> to vector<8x4xf32>
    %26 = arith.select %23, %25, %14 : vector<8x4xi1>, vector<8x4xf32>
    %c0_8 = arith.constant 0 : index
    %c2 = arith.constant 2 : index
    %c0_9 = arith.constant 0 : index
    %27 = vector.load %arg3[%c0_8, %c2, %c0_9] : memref<8x4x32xbf16, #tpu.memory_space<vmem>>, vector<8x1x32xbf16>
    %28 = vector.shape_cast %27 : vector<8x1x32xbf16> to vector<8x32xbf16>
    %29 = arith.extf %28 : vector<8x32xbf16> to vector<8x32xf32>
    %30 = vector.broadcast %0 : vector<1x32xf32> to vector<8x32xf32>
    %31 = arith.mulf %29, %30 : vector<8x32xf32>
    %cst_10 = arith.constant dense<0.000000e+00> : vector<8xf32>
    %32 = vector.multi_reduction <add>, %31, %cst_10 [1] : vector<8x32xf32> to vector<8xf32>
    %33 = vector.shape_cast %32 : vector<8xf32> to vector<8x1xf32>
    %c2_i32 = arith.constant 2 : i32
    %34 = vector.broadcast %c2_i32 : i32 to vector<8x4xi32>
    %35 = arith.cmpi eq, %1, %34 : vector<8x4xi32>
    %36 = vector.shape_cast %33 : vector<8x1xf32> to vector<8x1xf32>
    %37 = vector.broadcast %36 : vector<8x1xf32> to vector<8x4xf32>
    %38 = arith.select %35, %37, %26 : vector<8x4xi1>, vector<8x4xf32>
    %c0_11 = arith.constant 0 : index
    %c3 = arith.constant 3 : index
    %c0_12 = arith.constant 0 : index
    %39 = vector.load %arg3[%c0_11, %c3, %c0_12] : memref<8x4x32xbf16, #tpu.memory_space<vmem>>, vector<8x1x32xbf16>
    %40 = vector.shape_cast %39 : vector<8x1x32xbf16> to vector<8x32xbf16>
    %41 = arith.extf %40 : vector<8x32xbf16> to vector<8x32xf32>
    %42 = vector.broadcast %0 : vector<1x32xf32> to vector<8x32xf32>
    %43 = arith.mulf %41, %42 : vector<8x32xf32>
    %cst_13 = arith.constant dense<0.000000e+00> : vector<8xf32>
    %44 = vector.multi_reduction <add>, %43, %cst_13 [1] : vector<8x32xf32> to vector<8xf32>
    %45 = vector.shape_cast %44 : vector<8xf32> to vector<8x1xf32>
    %c3_i32 = arith.constant 3 : i32
    %46 = vector.broadcast %c3_i32 : i32 to vector<8x4xi32>
    %47 = arith.cmpi eq, %1, %46 : vector<8x4xi32>
    %48 = vector.shape_cast %45 : vector<8x1xf32> to vector<8x1xf32>
    %49 = vector.broadcast %48 : vector<8x1xf32> to vector<8x4xf32>
    %50 = arith.select %47, %49, %38 : vector<8x4xi1>, vector<8x4xf32>
    %cst_14 = arith.constant dense<0xFF800000> : vector<8xf32>
    %51 = vector.multi_reduction <maximumf>, %50, %cst_14 [1] : vector<8x4xf32> to vector<8xf32>
    %52 = vector.shape_cast %51 : vector<8xf32> to vector<8x1xf32>
    %53 = vector.broadcast %52 : vector<8x1xf32> to vector<8x4xf32>
    %54 = arith.subf %50, %53 : vector<8x4xf32>
    %55 = math.exp %54 : vector<8x4xf32>
    %cst_15 = arith.constant dense<0.000000e+00> : vector<8xf32>
    %56 = vector.multi_reduction <add>, %55, %cst_15 [1] : vector<8x4xf32> to vector<8xf32>
    %57 = vector.shape_cast %56 : vector<8xf32> to vector<8x1xf32>
    %58 = tpu.reciprocal %57 {approx = true} : vector<8x1xf32> -> vector<8x1xf32>
    %59 = vector.broadcast %58 : vector<8x1xf32> to vector<8x4xf32>
    %60 = arith.mulf %55, %59 : vector<8x4xf32>
    %61 = vector.extract_strided_slice %60 {offsets = [0, 0], sizes = [8, 1], strides = [1, 1]} : vector<8x4xf32> to vector<8x1xf32>
    %c0_16 = arith.constant 0 : index
    %c0_17 = arith.constant 0 : index
    %c0_18 = arith.constant 0 : index
    %62 = vector.load %arg3[%c0_16, %c0_17, %c0_18] : memref<8x4x32xbf16, #tpu.memory_space<vmem>>, vector<8x1x32xbf16>
    %63 = vector.shape_cast %62 : vector<8x1x32xbf16> to vector<8x32xbf16>
    %64 = arith.extf %63 : vector<8x32xbf16> to vector<8x32xf32>
    %65 = vector.broadcast %61 : vector<8x1xf32> to vector<8x32xf32>
    %66 = arith.mulf %65, %64 : vector<8x32xf32>
    %67 = vector.extract_strided_slice %60 {offsets = [0, 1], sizes = [8, 1], strides = [1, 1]} : vector<8x4xf32> to vector<8x1xf32>
    %c0_19 = arith.constant 0 : index
    %c1_20 = arith.constant 1 : index
    %c0_21 = arith.constant 0 : index
    %68 = vector.load %arg3[%c0_19, %c1_20, %c0_21] : memref<8x4x32xbf16, #tpu.memory_space<vmem>>, vector<8x1x32xbf16>
    %69 = vector.shape_cast %68 : vector<8x1x32xbf16> to vector<8x32xbf16>
    %70 = arith.extf %69 : vector<8x32xbf16> to vector<8x32xf32>
    %71 = vector.broadcast %67 : vector<8x1xf32> to vector<8x32xf32>
    %72 = arith.mulf %71, %70 : vector<8x32xf32>
    %73 = arith.addf %66, %72 : vector<8x32xf32>
    %74 = vector.extract_strided_slice %60 {offsets = [0, 2], sizes = [8, 1], strides = [1, 1]} : vector<8x4xf32> to vector<8x1xf32>
    %c0_22 = arith.constant 0 : index
    %c2_23 = arith.constant 2 : index
    %c0_24 = arith.constant 0 : index
    %75 = vector.load %arg3[%c0_22, %c2_23, %c0_24] : memref<8x4x32xbf16, #tpu.memory_space<vmem>>, vector<8x1x32xbf16>
    %76 = vector.shape_cast %75 : vector<8x1x32xbf16> to vector<8x32xbf16>
    %77 = arith.extf %76 : vector<8x32xbf16> to vector<8x32xf32>
    %78 = vector.broadcast %74 : vector<8x1xf32> to vector<8x32xf32>
    %79 = arith.mulf %78, %77 : vector<8x32xf32>
    %80 = arith.addf %73, %79 : vector<8x32xf32>
    %81 = vector.extract_strided_slice %60 {offsets = [0, 3], sizes = [8, 1], strides = [1, 1]} : vector<8x4xf32> to vector<8x1xf32>
    %c0_25 = arith.constant 0 : index
    %c3_26 = arith.constant 3 : index
    %c0_27 = arith.constant 0 : index
    %82 = vector.load %arg3[%c0_25, %c3_26, %c0_27] : memref<8x4x32xbf16, #tpu.memory_space<vmem>>, vector<8x1x32xbf16>
    %83 = vector.shape_cast %82 : vector<8x1x32xbf16> to vector<8x32xbf16>
    %84 = arith.extf %83 : vector<8x32xbf16> to vector<8x32xf32>
    %85 = vector.broadcast %81 : vector<8x1xf32> to vector<8x32xf32>
    %86 = arith.mulf %85, %84 : vector<8x32xf32>
    %87 = arith.addf %80, %86 : vector<8x32xf32>
    %88 = arith.truncf %87 : vector<8x32xf32> to vector<8x32xbf16>
    %c0_28 = arith.constant 0 : index
    %c0_29 = arith.constant 0 : index
    %89 = vector.load %arg2[%c0_28, %c0_29] : memref<32x128xbf16, #tpu.memory_space<vmem>>, vector<32x128xbf16>
    %cst_30 = arith.constant dense<0.000000e+00> : vector<8x128xf32>
    %90 = tpu.matmul %88, %89, %cst_30 {dimension_numbers = #tpu.dot_dimension_numbers<[1], [0], [0], [1], [0, 0, 1, 1], [], []>} : vector<8x32xbf16>, vector<32x128xbf16>, vector<8x128xf32> -> vector<8x128xf32>
    %c0_31 = arith.constant 0 : index
    %c0_32 = arith.constant 0 : index
    %91 = vector.load %arg4[%c0_31, %c0_32] : memref<8x128xf32, #tpu.memory_space<vmem>>, vector<8x128xf32>
    tpu.vector_store %arg4[%c0_31, %c0_32], %90 {strides = array<i32>} : memref<8x128xf32, #tpu.memory_space<vmem>>, vector<8x128xf32>,
    return
  }
  func.func @transform_0(%arg0: i32) -> (i32, i32) {
    %c0_i32 = arith.constant 0 : i32
    %c0_i32_0 = arith.constant 0 : i32
    %c0_i32_1 = arith.constant 0 : i32
    return %c0_i32, %c0_i32_0 : i32, i32
  }
  func.func @transform_1(%arg0: i32) -> (i32, i32) {
    %c0_i32 = arith.constant 0 : i32
    %c0_i32_0 = arith.constant 0 : i32
    %c0_i32_1 = arith.constant 0 : i32
    return %c0_i32, %c0_i32_0 : i32, i32
  }
  func.func @transform_2(%arg0: i32) -> (i32, i32, i32) {
    %c0_i32 = arith.constant 0 : i32
    %c0_i32_0 = arith.constant 0 : i32
    %c0_i32_1 = arith.constant 0 : i32
    return %arg0, %c0_i32, %c0_i32_0 : i32, i32, i32
  }
  func.func @transform_3(%arg0: i32) -> (i32, i32) {
    %c0_i32 = arith.constant 0 : i32
    %c0_i32_0 = arith.constant 0 : i32
    return %arg0, %c0_i32 : i32, i32
  }
}

</mosaic_0001>

<bundles_post_ra>
// kernel: attention_pooling.1
= control target key start
LH: loop header
LB: loop body
LE: loop exit
PB: predicated region body
PF: predicated region fallthrough
CT: control target
= control target key end

     0   :  { %v16_v9 = vlaneseq  ;;  %vm102_vm0 = vcmask 1041409   ;;  %vm104_vm1 = vcmask 1042434   ;;  %vm106_vm2 = vcmask 1043459   ;;  %s1101_s0 = inlined_call_operand.vmem [shape: f32[1,32], index: 0, kind: input, shape index: {}]   ;;  %s1102_s2 = inlined_call_operand.vmem [shape: bf16[8,4,32], index: 2, kind: input, shape index: {}]   ;;  %s1103_s1 = inlined_call_operand.vmem [shape: bf16[32,128], index: 1, kind: input, shape index: {}]   ;;  %s1104_s3 = inlined_call_operand.vmem [shape: f32[8,128], index: 3, kind: output, shape index: {}]  }
   0x1   :  { %v760_v0 = vld [vmem:[%s1101_s0] ss:$0 sm:$0xff]  ;;  %v19_v2 = vld [vmem:[%s1102_s2 + $0x2] sm:$0x1]  ;;  %v20_v3 = vld [vmem:[%s1102_s2 + $0x4] sm:$0x1] }
   0x2   :  { %v18_v1 = vld [vmem:[%s1102_s2] sm:$0x1]  ;;  %v21_v4 = vld [vmem:[%s1102_s2 + $0x6] sm:$0x1]  ;;  %v22_v5 = vld [vmem:[%s1102_s2 + $0x8] sm:$0x1]  ;;  %v779_v7 = vunpack.c.l.bf16 %v19_v2  ;;  %v783_v8 = vcombine.high %v760_v0, %v760_v0  ;;  %v794_v13 = vunpack.c.l.bf16 %v20_v3 }
   0x3   :  { %v777_v6 = vunpack.c.l.bf16 %v18_v1  ;;  %v23_v10 = vld [vmem:[%s1102_s2 + $0xa] sm:$0x1]  ;;  %v24_v11 = vld [vmem:[%s1102_s2 + $0xc] sm:$0x1]  ;;  %v25_v12 = vld [vmem:[%s1102_s2 + $0xe] sm:$0x1]  ;;  %v796_v14 = vunpack.c.l.bf16 %v21_v4  ;;  %v798_v15 = vunpack.c.l.bf16 %v22_v5 }
   0x4   :  { %v800_v16 = vunpack.c.l.bf16 %v23_v10  ;;  %v802_v17 = vunpack.c.l.bf16 %v24_v11  ;;  %v804_v18 = vunpack.c.l.bf16 %v25_v12  ;;  %v807_v19 = vrot.slane %v760_v0, 1  ;;  %v197_v62 = vld [vmem:[%s1102_s2] sm:$0x2]  ;;  %v198_v63 = vld [vmem:[%s1102_s2 + $0x2] sm:$0x2] }
   0x5   :  { %v41_v20 = vrot.slane %v760_v0, 2  ;;  %v42_v21 = vrot.slane %v760_v0, 3  ;;  %v812_v22 = vrot.slane %v783_v8, 1  ;;  %v44_v23 = vrot.slane %v783_v8, 2  ;;  %v199_v5 = vld [vmem:[%s1102_s2 + $0x4] sm:$0x2] }
   0x6   :  { %v45_v24 = vrot.slane %v783_v8, 3  ;;  %v54_v25 = vmul.f32 %v760_v0, %v777_v6  ;;  %v55_v26 = vmul.f32 %v807_v19, %v779_v7  ;;  %v58_v29 = vmul.f32 %v783_v8, %v798_v15  ;;  %v200_v10 = vld [vmem:[%s1102_s2 + $0x6] sm:$0x2] }
   0x7   :  { %v56_v27 = vmul.f32 %v41_v20, %v794_v13  ;;  %v57_v28 = vmul.f32 %v42_v21, %v796_v14  ;;  %v59_v30 = vmul.f32 %v812_v22, %v800_v16  ;;  %v60_v31 = vmul.f32 %v44_v23, %v802_v17  ;;  %v201_v21 = vld [vmem:[%s1102_s2 + $0x8] sm:$0x2] }
   0x8   :  { %v61_v32 = vmul.f32 %v45_v24, %v804_v18  ;;  %v829_v33 = vshrl.u32 %v16_v9, 7  ;;  %vm108_vm3 = vcmask 1044484   ;;  %vm110_vm4 = vcmask 1045509  }
   0x9   :  { %vm112_vm5 = vcmask 1046534   ;;  %vm114_vm6 = vcmask 1047559   ;;  %v134_v34 = vmul.f32 %v44_v23, %v804_v18  ;;  %vm117_vm7 = vcmask 261120   ;;  %v202_v23 = vld [vmem:[%s1102_s2 + $0xa] sm:$0x2] }
   0xa   :  { %v833_v35 = vsub.s32 0, %v829_v33  ;;  %v836_v36 = vsub.s32 1, %v829_v33  ;;  %vm187_vm8 = vcmask 253952   ;;  %v839_v37 = vrot.slane %v760_v0, 7 }
   0xb   :  { %v842_v38 = vrot.slane %v783_v8, 7  ;;  %v128_v39 = vmul.f32 %v760_v0, %v779_v7  ;;  %v129_v40 = vmul.f32 %v807_v19, %v794_v13  ;;  %v130_v41 = vmul.f32 %v41_v20, %v796_v14 }
   0xc   :  { %v73_v42 = vrot.slane %v54_v25, %v833_v35  ;;  %v77_v43 = vrot.slane %v55_v26, %v833_v35  ;;  %v81_v44 = vrot.slane %v56_v27, %v833_v35  ;;  %v85_v45 = vrot.slane %v57_v28, %v833_v35 }
   0xd   :  { %v89_v46 = vrot.slane %v58_v29, %v833_v35  ;;  %v93_v47 = vrot.slane %v59_v30, %v833_v35  ;;  %v97_v48 = vrot.slane %v60_v31, %v833_v35  ;;  %v101_v49 = vrot.slane %v61_v32, %v833_v35 }
   0xe   :  { %v103_v50 = vsel %vm102_vm0, %v77_v43, %v73_v42  ;;  %v174_v51 = vrot.slane %v134_v34, %v836_v36  ;;  %v127_v52 = vmul.f32 %v839_v37, %v777_v6  ;;  %v131_v53 = vmul.f32 %v842_v38, %v798_v15 }
   0xf   :  { %v105_v54 = vsel %vm104_vm1, %v81_v44, %v103_v50  ;;  %v132_v55 = vmul.f32 %v783_v8, %v800_v16  ;;  %v133_v56 = vmul.f32 %v812_v22, %v802_v17  ;;  %v150_v57 = vrot.slane %v128_v39, %v836_v36 }
  0x10   :  { %v107_v58 = vsel %vm106_vm2, %v85_v45, %v105_v54  ;;  %v188_v59 = vsel %vm187_vm8, %v174_v51, 0.0  ;;  %v146_v60 = vrot.slane %v127_v52, %v836_v36  ;;  %v154_v61 = vrot.slane %v129_v40, %v836_v36  ;;  %v203_v45 = vld [vmem:[%s1102_s2 + $0xc] sm:$0x2] }
  0x11   :  { %v109_v1 = vsel %vm108_vm3, %v89_v46, %v107_v58  ;;  %189 = vadd.xlane.f32.xlu1 %v188_v59  ;;  %v158_v2 = vrot.slane %v130_v41, %v836_v36  ;;  %v162_v3 = vrot.slane %v131_v53, %v836_v36  ;;  %v166_v4 = vrot.slane %v132_v55, %v836_v36  ;;  %v204_v46 = vld [vmem:[%s1102_s2 + $0xe] sm:$0x2] }
  0x12   :  { %v111_v11 = vsel %vm110_vm4, %v93_v47, %v109_v1  ;;  %v170_v12 = vrot.slane %v133_v56, %v836_v36  ;;  %v175_v20 = vsel %vm104_vm1, %v150_v57, %v146_v60  ;;  %vm183_vm9 = vcmask 261121  }
  0x13   :  { %v113_v24 = vsel %vm112_vm5, %v97_v48, %v111_v11  ;;  %v176_v25 = vsel %vm106_vm2, %v154_v61, %v175_v20  ;;  %v900_v26 = vunpack.c.l.bf16 %v197_v62  ;;  %v902_v27 = vunpack.c.l.bf16 %v198_v63 }
  0x14   :  { %v115_v28 = vsel %vm114_vm6, %v101_v49, %v113_v24  ;;  %v177_v29 = vsel %vm108_vm3, %v158_v2, %v176_v25  ;;  %v906_v30 = vunpack.c.l.bf16 %v199_v5  ;;  %v908_v31 = vunpack.c.l.bf16 %v200_v10 }
  0x15   :  { %v118_v32 = vsel %vm117_vm7, %v115_v28, 0.0  ;;  %v178_v34 = vsel %vm110_vm4, %v162_v3, %v177_v29  ;;  %v912_v39 = vunpack.c.l.bf16 %v201_v21  ;;  %v914_v40 = vunpack.c.l.bf16 %v202_v23 }
  0x16   :  { %119 = vadd.xlane.f32.xlu0 %v118_v32  ;;  %v179_v41 = vsel %vm112_vm5, %v166_v4, %v178_v34  ;;  %v213_v42 = vrot.slane %v760_v0, 6  ;;  %v214_v43 = vrot.slane %v783_v8, 6  ;;  %v218_v44 = vmul.f32 %v902_v27, %v839_v37 }
  0x17   :  { %v180_v47 = vsel %vm114_vm6, %v170_v12, %v179_v41  ;;  %v219_v48 = vmul.f32 %v760_v0, %v906_v30  ;;  %v220_v49 = vmul.f32 %v908_v31, %v807_v19  ;;  %v222_v50 = vmul.f32 %v914_v40, %v842_v38 }
  0x18   :  { %v184_v51 = vsel %vm183_vm9, %v180_v47, 0.0  ;;  %v217_v52 = vmul.f32 %v213_v42, %v900_v26  ;;  %v221_v53 = vmul.f32 %v214_v43, %v912_v39  ;;  %v938_v54 = vsub.s32 2, %v829_v33 }
  0x19   :  { %vm273_vm10 = vcmask 261122   ;;  %v940_v55 = vunpack.c.l.bf16 %v203_v45  ;;  %v942_v56 = vunpack.c.l.bf16 %v204_v46  ;;  %vm277_vm11 = vcmask 254976  }
  0x1a   :  { %185 = vadd.xlane.f32.xlu0 %v184_v51  ;;  %v236_v19 = vrot.slane %v217_v52, %v938_v54  ;;  %v240_v57 = vrot.slane %v218_v44, %v938_v54  ;;  %v244_v58 = vrot.slane %v219_v48, %v938_v54  ;;  %v248_v59 = vrot.slane %v220_v49, %v938_v54 }
  0x1b   :  { %v252_v60 = vrot.slane %v221_v53, %v938_v54  ;;  %v256_v61 = vrot.slane %v222_v50, %v938_v54  ;;  %v223_v62 = vmul.f32 %v940_v55, %v783_v8  ;;  %v224_v63 = vmul.f32 %v942_v56, %v812_v22 }
  0x1c   :  { %v265_v1 = vsel %vm106_vm2, %v240_v57, %v236_v19  ;;  %v292_v2 = vrot.slane %v760_v0, 5  ;;  %v293_v3 = vrot.slane %v783_v8, 5  ;;  %v297_v4 = vmul.f32 %v213_v42, %v902_v27 }
  0x1d   :  { %v266_v5 = vsel %vm108_vm3, %v244_v58, %v265_v1  ;;  %v260_v10 = vrot.slane %v223_v62, %v938_v54  ;;  %v264_v11 = vrot.slane %v224_v63, %v938_v54  ;;  %v298_v12 = vmul.f32 %v906_v30, %v839_v37 }
  0x1e   :  { %v267_v20 = vsel %vm110_vm4, %v248_v59, %v266_v5  ;;  %v296_v22 = vmul.f32 %v292_v2, %v900_v26  ;;  %v299_v21 = vmul.f32 %v760_v0, %v908_v31  ;;  %v300_v23 = vmul.f32 %v293_v3, %v912_v39 }
  0x1f   :  { %v268_v24 = vsel %vm112_vm5, %v252_v60, %v267_v20  ;;  %v270_v25 = vsel %vm102_vm0, %v264_v11, %v260_v10  ;;  %v971_v28 = vsub.s32 3, %v829_v33  ;;  %v301_v32 = vmul.f32 %v214_v43, %v914_v40 }
  0x20   :  { %v269_v29 = vsel %vm114_vm6, %v256_v61, %v268_v24  ;;  %v278_v37 = vsel %vm277_vm11, %v270_v25, 0.0  ;;  %v302_v34 = vmul.f32 %v940_v55, %v842_v38  ;;  %v303_v43 = vmul.f32 %v942_v56, %v783_v8 }
  0x21   :  { %v274_v0 = vsel %vm273_vm10, %v269_v29, 0.0  ;;  %279 = vadd.xlane.f32.xlu0 %v278_v37  ;;  %v315_v41 = vrot.slane %v296_v22, %v971_v28  ;;  %v319_v42 = vrot.slane %v297_v4, %v971_v28  ;;  %v323_v44 = vrot.slane %v298_v12, %v971_v28 }
  0x22   :  { %275 = vadd.xlane.f32.xlu1 %v274_v0  ;;  %v327_v33 = vrot.slane %v299_v21, %v971_v28  ;;  %v331_v45 = vrot.slane %v300_v23, %v971_v28  ;;  %v335_v46 = vrot.slane %v301_v32, %v971_v28  ;;  %v339_v47 = vrot.slane %v302_v34, %v971_v28 }
  0x23   :  { %v344_v38 = vsel %vm108_vm3, %v319_v42, %v315_v41  ;;  %vm352_vm12 = vcmask 261123   ;;  %v343_v49 = vrot.slane %v303_v43, %v971_v28  ;;  %vm356_vm13 = vcmask 256000  }
  0x24   :  { %v345_v48 = vsel %vm110_vm4, %v323_v44, %v344_v38  ;;  %v348_v51 = vsel %vm102_vm0, %v339_v47, %v335_v46  ;;  %v17_v57 = vand.u32 127, %v16_v9  ;;  %vm284_vm2 = vcmask 1040384  }
  0x25   :  { %v346_v50 = vsel %vm112_vm5, %v327_v33, %v345_v48  ;;  %v349_v8 = vsel %vm104_vm1, %v343_v49, %v348_v51  ;;  %vm370_vm10 = vcmask 31747   ;;  %vm374_vm11 = vcmask 26624  }
  0x26   :  { %v347_v52 = vsel %vm114_vm6, %v331_v45, %v346_v50  ;;  %v357_v19 = vsel %vm356_vm13, %v349_v8, 0.0  ;;  %vm121_vm14 = vcmp.eq.s32.totalorder %v17_v57, 0  ;;  %vm191_vm15 = vcmp.eq.s32.totalorder %v17_v57, 1 }
  0x27   :  { %v353_v53 = vsel %vm352_vm12, %v347_v52, 0.0  ;;  %358 = vadd.xlane.f32.xlu0 %v357_v19  ;;  %vm281_vm8 = vcmp.eq.s32.totalorder %v17_v57, 2  ;;  %vm360_vm9 = vcmp.eq.s32.totalorder %v17_v57, 3  ;;  %v731_v38 = vmov 0   ;;  %v721_v57 = vld [vmem:[%s1103_s1] sm:$0xff]  }
  0x28   :  { %354 = vadd.xlane.f32.xlu1 %v353_v53  ;;  %713 = vset.pattern.permute.xlu0 %v731_v38  ;;  %v732_v8 = vmov 1   ;;  %v733_v53 = vmov 3   ;;  %v734_v19 = vmov 2   ;;  %vm736_vm12 = vmmov 0  }
  0x29   :  { %712 = vset.pattern.permute.xlu1 %v731_v38 }
  0x9e   :  { %v190_v60 = vpop.xlane.xlu1 %189 }
  0xa3   :  { %v120_v58 = vpop.xlane.xlu0 %119 }
  0xa4   :  { %v122_v59 = vsel %vm121_vm14, %v120_v58, 0.0  ;;  %v735_v58 = vmov 0.0  }
  0xa5   :  { %v193_v61 = vrot.slane %v122_v59, 7  ;;  %698 = vmatprep.subr.bf16.mxu0 %v735_v58  ;;  %v722_v59 = vld [vmem:[%s1103_s1 + $0x8] sm:$0xff]   ;;  %702 = vmatprep.mubr.msk.bf16.mxu0 %vm736_vm12, %v735_v58 }
  0xa6   :  { %699 = vmatpush3.bf16.msra.mxu0 %v721_v57 }
  0xa7   :  { %v196_v62 = vsel %vm191_vm15, %v190_v60, %v193_v61  ;;  %v186_v63 = vpop.xlane.xlu0 %185  ;;  %700 = vmatprep.subr.bf16.mxu0 %v735_v58 }
  0xa8   :  { %v286_v1 = vrot.slane %v196_v62, 7  ;;  %v195_v2 = vsel %vm191_vm15, %v186_v63, %v193_v61  ;;  %v415_v62 = vrot.slane %v777_v6, %v833_v35  ;;  %v419_v63 = vrot.slane %v779_v7, %v833_v35 }
  0xa9   :  { %v285_v3 = vrot.slane %v195_v2, 7  ;;  %v469_v2 = vrot.slane %v779_v7, %v836_v36  ;;  %v577_v7 = vrot.slane %v900_v26, %v971_v28 }
  0xaa   :  { %701 = vmatpush3.bf16.msra.mxu0 %v722_v59 }
  0xab   :  { %v287_v4 = vsel %vm284_vm2, %v285_v3, %v286_v1  ;;  %v465_v1 = vrot.slane %v777_v6, %v836_v36 }
  0xad   :  { %v494_v6 = vsel %vm108_vm3, %v469_v2, %v465_v1 }
  0xae   :  { %v280_v5 = vpop.xlane.xlu0 %279 }
  0xaf   :  { %v276_v10 = vpop.xlane.xlu1 %275  ;;  %v291_v11 = vsel %vm281_vm8, %v280_v5, %v287_v4  ;;  %v444_v5 = vsel %vm108_vm3, %v419_v63, %v415_v62 }
  0xb0   :  { %v290_v12 = vsel %vm281_vm8, %v276_v10, %v285_v3  ;;  %v364_v20 = vrot.slane %v291_v11, 7  ;;  %v423_v3 = vrot.slane %v794_v13, %v833_v35  ;;  %v525_v10 = vrot.slane %v900_v26, %v938_v54 }
  0xb1   :  { %v363_v9 = vrot.slane %v290_v12, 7  ;;  %v529_v11 = vrot.slane %v902_v27, %v938_v54  ;;  %v473_v12 = vrot.slane %v794_v13, %v836_v36  ;;  %v477_v13 = vrot.slane %v796_v14, %v836_v36 }
  0xb3   :  { %v365_v22 = vsel %vm284_vm2, %v363_v9, %v364_v20  ;;  %v581_v20 = vrot.slane %v902_v27, %v971_v28  ;;  %v485_v27 = vrot.slane %v800_v16, %v836_v36 }
  0xb4   :  { %v359_v23 = vpop.xlane.xlu0 %358 }
  0xb5   :  { %v355_v21 = vpop.xlane.xlu1 %354  ;;  %v369_v25 = vsel %vm360_vm9, %v359_v23, %v365_v22  ;;  %v431_v22 = vrot.slane %v798_v15, %v833_v35  ;;  %v533_v23 = vrot.slane %v906_v30, %v938_v54 }
  0xb6   :  { %v368_v24 = vsel %vm360_vm9, %v355_v21, %v363_v9  ;;  %v375_v37 = vsel %vm374_vm11, %v369_v25, -inf  ;;  %v427_v9 = vrot.slane %v796_v14, %v833_v35  ;;  %v445_v21 = vsel %vm110_vm4, %v423_v3, %v444_v5 }
  0xb7   :  { %v371_v29 = vsel %vm370_vm10, %v368_v24, -inf  ;;  %376 = vmax.xlane.f32.xlu0 %v375_v37  ;;  %v439_v37 = vrot.slane %v802_v17, %v833_v35  ;;  %v585_v14 = vrot.slane %v906_v30, %v971_v28  ;;  %v493_v30 = vrot.slane %v804_v18, %v836_v36 }
  0xb8   :  { %372 = vmax.xlane.f32.xlu1 %v371_v29  ;;  %v435_v29 = vrot.slane %v800_v16, %v833_v35  ;;  %v446_v16 = vsel %vm112_vm5, %v427_v9, %v445_v21 }
  0xba   :  { %v448_v38 = vsel %vm102_vm0, %v439_v37, %v435_v29 }
 0x144   :  { %v377_v34 = vpop.xlane.xlu0 %376 }
 0x145   :  { %v373_v32 = vpop.xlane.xlu1 %372  ;;  %v379_v41 = vsub.f32 %v369_v25, %v377_v34  ;;  %v489_v25 = vrot.slane %v802_v17, %v836_v36  ;;  %v537_v34 = vrot.slane %v908_v31, %v938_v54  ;;  %v481_v17 = vrot.slane %v798_v15, %v836_v36 }
 0x146   :  { %v378_v0 = vsub.f32 %v368_v24, %v373_v32  ;;  %v554_v24 = vsel %vm108_vm3, %v529_v11, %v525_v10  ;;  %v495_v32 = vsel %vm110_vm4, %v473_v12, %v494_v6  ;;  %v541_v15 = vrot.slane %v912_v39, %v938_v54 }
 0x147   :  { %v382_v44 = vmul.f32 1.442695, %v379_v41  ;;  %v545_v41 = vrot.slane %v914_v40, %v938_v54  ;;  %v553_v36 = vrot.slane %v942_v56, %v938_v54 }
 0x148   :  { %v380_v42 = vmul.f32 1.442695, %v378_v0  ;;  %v606_v0 = vsel %vm108_vm3, %v581_v20, %v577_v7 }
 0x14a   :  { %723 = vpow2.f32 %v380_v42  ;;  %v549_v42 = vrot.slane %v940_v55, %v938_v54 }
 0x14b   :  { %725 = vpow2.f32 %v382_v44  ;;  %v555_v44 = vsel %vm110_vm4, %v533_v23, %v554_v24 }
 0x154   :  { %v724_v33 = vpop.eup %723 }
 0x155   :  { %v726_v45 = vpop.eup %725  ;;  %v384_v43 = vsel %vm370_vm10, %v724_v33, 0.0 }
 0x156   :  { %385 = vadd.xlane.f32.xlu1 %v384_v43  ;;  %v387_v46 = vsel %vm374_vm11, %v726_v45, 0.0  ;;  %v589_v43 = vrot.slane %v908_v31, %v971_v28  ;;  %v597_v31 = vrot.slane %v914_v40, %v971_v28 }
 0x157   :  { %388 = vadd.xlane.f32.xlu0 %v387_v46  ;;  %v498_v46 = vsel %vm102_vm0, %v489_v25, %v485_v27 }
 0x1e3   :  { %v386_v47 = vpop.xlane.xlu1 %385 }
 0x1e4   :  { %727 = vrcp.f32 %v386_v47  ;;  %v389_v48 = vpop.xlane.xlu0 %388  ;;  %v607_v47 = vsel %vm110_vm4, %v585_v14, %v606_v0 }
 0x1e5   :  { %729 = vrcp.f32 %v389_v48  ;;  %v608_v54 = vsel %vm112_vm5, %v589_v43, %v607_v47 }
 0x1ee   :  { %v728_v49 = vpop.eup %727 }
 0x1ef   :  { %v730_v50 = vpop.eup %729  ;;  %v392_v51 = vmul.f32 %v728_v49, %v724_v33  ;;  %v443_v33 = vrot.slane %v804_v18, %v833_v35  ;;  %v556_v18 = vsel %vm112_vm5, %v537_v34, %v555_v44  ;;  %v558_v35 = vsel %vm102_vm0, %v549_v42, %v545_v41 }
 0x1f0   :  { %v393_v52 = vmul.f32 %v730_v50, %v726_v45  ;;  %v496_v45 = vsel %vm112_vm5, %v477_v13, %v495_v32  ;;  %v601_v49 = vrot.slane %v940_v55, %v971_v28  ;;  %v557_v57 = vsel %vm114_vm6, %v541_v15, %v556_v18 }
 0x1f1   :  { %396 = vperm.xlu1 %712, %v392_v51   ;;  %v497_v50 = vsel %vm114_vm6, %v481_v17, %v496_v45  ;;  %v559_v40 = vsel %vm104_vm1, %v553_v36, %v558_v35  ;;  %v605_v55 = vrot.slane %v942_v56, %v971_v28 }
 0x1f2   :  { %401 = vperm.xlu0 %713, %v393_v52  }
 0x1f5   :  { %714 = vset.pattern.permute.xlu1 %v732_v8 }
 0x1f6   :  { %455 = vperm.xlu1 %714, %v392_v51   ;;  %720 = vset.pattern.permute.xlu0 %v733_v53 }
 0x1fa   :  { %715 = vset.pattern.permute.xlu1 %v734_v19 }
 0x1fb   :  { %507 = vperm.xlu1 %715, %v392_v51  }
 0x1ff   :  { %716 = vset.pattern.permute.xlu1 %v733_v53 }
 0x200   :  { %567 = vperm.xlu1 %716, %v392_v51   ;;  %v593_v51 = vrot.slane %v912_v39, %v971_v28  ;;  %v610_v39 = vsel %vm102_vm0, %v601_v49, %v597_v31 }
 0x201   :  { %v611_v10 = vsel %vm104_vm1, %v605_v55, %v610_v39 }
 0x202   :  { %v609_v63 = vsel %vm114_vm6, %v593_v51, %v608_v54 }
 0x204   :  { %717 = vset.pattern.permute.xlu1 %v732_v8  ;;  %v447_v8 = vsel %vm114_vm6, %v431_v22, %v446_v16 }
 0x205   :  { %459 = vperm.xlu1 %717, %v393_v52  }
 0x209   :  { %718 = vset.pattern.permute.xlu1 %v734_v19 }
 0x20a   :  { %511 = vperm.xlu1 %718, %v393_v52  }
 0x20e   :  { %719 = vset.pattern.permute.xlu1 %v733_v53  ;;  %v449_v53 = vsel %vm104_vm1, %v443_v33, %v448_v38 }
 0x20f   :  { %571 = vperm.xlu1 %719, %v393_v52   ;;  %v499_v52 = vsel %vm104_vm1, %v493_v30, %v498_v46 }
 0x270   :  { %v1006_v60 = vpop.permute.xlu1 %396 }
 0x271   :  { %v402_v19 = vpop.permute.xlu0 %401  ;;  %v452_v1 = vmul.f32 %v447_v8, %v1006_v60 }
 0x272   :  { %v453_v2 = vmul.f32 %v449_v53, %v402_v19 }
 0x275   :  { %v456_v61 = vpop.permute.xlu1 %455 }
 0x276   :  { %v502_v58 = vmul.f32 %v497_v50, %v456_v61 }
 0x278   :  { %v504_v11 = vadd.f32 %v502_v58, %v452_v1 }
 0x27a   :  { %v508_v4 = vpop.permute.xlu1 %507 }
 0x27b   :  { %v562_v3 = vmul.f32 %v557_v57, %v508_v4 }
 0x27d   :  { %v564_v20 = vadd.f32 %v562_v3, %v504_v11 }
 0x27f   :  { %v568_v26 = vpop.permute.xlu1 %567 }
 0x280   :  { %v614_v12 = vmul.f32 %v609_v63, %v568_v26 }
 0x282   :  { %v616_v61 = vadd.f32 %v614_v12, %v564_v20 }
 0x284   :  { %v460_v48 = vpop.permute.xlu1 %459 }
 0x285   :  { %v503_v59 = vmul.f32 %v499_v52, %v460_v48 }
 0x287   :  { %v505_v6 = vadd.f32 %v503_v59, %v453_v2 }
 0x289   :  { %v512_v62 = vpop.permute.xlu1 %511 }
 0x28a   :  { %v563_v5 = vmul.f32 %v559_v40, %v512_v62 }
 0x28c   :  { %v565_v56 = vadd.f32 %v563_v5, %v505_v6 }
 0x28e   :  { %v572_v7 = vpop.permute.xlu1 %571 }
 0x28f   :  { %v615_v28 = vmul.f32 %v611_v10, %v572_v7 }
 0x291   :  { %v617_v9 = vadd.f32 %v615_v28, %v565_v56 }
 0x293   :  { %v618_v22 = vpack.c.bf16 %v617_v9, %v616_v61 }
 0x295   :  { %v624_v21 = vshrl.u32 %v618_v22, 16  ;;  %v627_v23 = vshll.u32 %v618_v22, 16 }
 0x297   :  { %v626_v13 = vrot.slane %v624_v21, 1  ;;  %v629_v24 = vrot.slane %v627_v23, 2 }
 0x299   :  { %v630_v60 = vor.u32 %v629_v24, %v626_v13 }
 0x29b   :  { %703 = vmatmul.mubr.msk.bf16.vlgmr.msra.gmra.mrb[0].mxu0 %vm117_vm7, %v630_v60 }
 0x36e   :  { %v680_v4 = vpop.f32.mrb[0].mxu0 }
 0x36f   :  { %686 = vst [vmem:[%s1104_s3] sm:$0xff] %v680_v4  ;;  %v704_v26 = vpop.f32.mrb[1].mxu0 }
 0x370   :  { %v683_v27 = vpop.f32.mrb[2].mxu0 }
 0x371   :  { %v705_v25 = vpop.f32.mrb[3].mxu0 }

</bundles_post_ra>
